<compile_context>
chip_gen: v6e
topology: v6e:2x2x1
jax: 0.10.0
libtpu: 0.0.40
codegen_flags: <defaults>
</compile_context>

<pallas_src>
import functools

import jax
import jax.numpy as jnp
from jax.experimental import pallas as pl
from jax.experimental.pallas import tpu as pltpu


_NEG = -1.0e30  # finite "-inf"; placed in padded bias columns to mask them
_VMEM_LIMIT = 32 * 1024 * 1024  # above the v5e default (16 MiB), safe on all gens


def _round_up(x, m):
    return ((x + m - 1) // m) * m


def _pick_vocab_tile(v_pad):
    # v_pad is always a multiple of 128; prefer the largest MXU-aligned tile
    # that divides it exactly (no padding -> no output slice).
    for t in (512, 256, 128):
        if v_pad % t == 0:
            return t
    return 128


def _pick_row_tile(n):
    # Prefer a tile that divides N exactly (avoids row padding and the
    # wrapper-side slice); cap at 512 (cuts weight re-streaming vs 256).
    for t in (512, 256, 128, 64, 32, 16):
        if n % t == 0:
            # v7x megacore: if this would give a single row tile but N is large
            # enough, split into two tiles so the "parallel" row axis shards
            # across both TensorCores.
            if t == n and n >= 256 and (n // 2) % 16 == 0:
                return n // 2
            return t
    return min(512, _round_up(max(n, 1), 16))


# ---------------------------------------------------------------------------
# Fused training kernel: logits = x @ W + b  (MXU, bf16 in / f32 acc)
#                        + online log-sum-exp, gold-logit gather, argmax acc
# ---------------------------------------------------------------------------
def _lm_head_stats_kernel(h_ref, w_ref, b_ref, gold_ref, mask_ref,
                          logits_ref, nll_ref, corr_ref,
                          m_sc, l_sc, g_sc, a_sc, *, n_valid):
    # NOTE: program_id/num_programs must stay OUTSIDE the pl.when closures
    # (they cannot be lowered when nested inside lax.cond branches in
    # interpret mode).
    i = pl.program_id(0)
    j = pl.program_id(1)
    last_j = pl.num_programs(1) - 1

    @pl.when(j == 0)
    def _init():
        m_sc[...] = jnp.full_like(m_sc, _NEG)     # running row max
        l_sc[...] = jnp.zeros_like(l_sc)          # running sum exp(logit - max)
        g_sc[...] = jnp.zeros_like(g_sc)          # gold logit
        a_sc[...] = jnp.full_like(a_sc, -1)       # running argmax column

    # MXU matmul: bf16 inputs, f32 accumulation; bias add in f32 on the VPU.
    # Padded vocab columns carry bias = -1e30, which also masks them for the
    # max / argmax / LSE below (no extra compare+select pass needed).
    logits = jnp.dot(h_ref[...], w_ref[...], preferred_element_type=jnp.float32)
    logits = logits + b_ref[...]                  # (tm, tn) + (1, tn)
    logits_ref[...] = logits.astype(logits_ref.dtype)   # bf16 store (lane-dense)

    tm, tn = logits.shape
    col = jax.lax.broadcasted_iota(jnp.int32, (tm, tn), 1) + j * tn

    # --- online max / argmax (first occurrence across vocab tiles) ---
    tile_m = jnp.max(logits, axis=-1, keepdims=True)
    big = jnp.int32(2 ** 30)
    tile_arg = jnp.min(jnp.where(logits == tile_m, col, big),
                       axis=-1, keepdims=True)
    m_prev = m_sc[...]
    m_new = jnp.maximum(m_prev, tile_m)
    a_sc[...] = jnp.where(tile_m > m_prev, tile_arg, a_sc[...])

    # --- online log-sum-exp ---
    l_sc[...] = l_sc[...] * jnp.exp(m_prev - m_new) + jnp.sum(
        jnp.exp(logits - m_new), axis=-1, keepdims=True)
    m_sc[...] = m_new

    # --- gold-logit gather via one-hot on this vocab tile (gold < V always,
    #     so padded columns never match; `col` is reused from the argmax) ---
    gold = gold_ref[...]                          # (tm, 1) int32
    g_sc[...] += jnp.sum(jnp.where(col == gold, logits, 0.0),
                         axis=-1, keepdims=True)

    @pl.when(j == last_j)
    def _finalize():
        row = jax.lax.broadcasted_iota(jnp.int32, (tm, 1), 0) + i * tm
        row_valid = (row < n_valid).astype(jnp.float32)
        lse = m_sc[...] + jnp.log(l_sc[...])
        nll_ref[...] = (lse - g_sc[...]) * row_valid
        corr_ref[...] = ((a_sc[...] == gold_ref[...]).astype(jnp.float32)
                        * mask_ref[...] * row_valid)


# ---------------------------------------------------------------------------
# Logits-only kernel (is_test=True): matmul + bias, f32 output.
# ---------------------------------------------------------------------------
def _lm_head_logits_kernel(h_ref, w_ref, b_ref, logits_ref):
    logits = jnp.dot(h_ref[...], w_ref[...], preferred_element_type=jnp.float32)
    logits_ref[...] = (logits + b_ref[...]).astype(logits_ref.dtype)


def _call_stats(h_bf, w_bf, b2, gold2, mask2, *, tm, tn, n_valid):
    n_pad, d = h_bf.shape
    v_pad = w_bf.shape[1]
    grid = (n_pad // tm, v_pad // tn)
    kernel = functools.partial(_lm_head_stats_kernel, n_valid=n_valid)
    return pl.pallas_call(
        kernel,
        out_shape=(
            jax.ShapeDtypeStruct((n_pad, v_pad), jnp.bfloat16),  # logits (bf16)
            jax.ShapeDtypeStruct((n_pad, 1), jnp.float32),       # per-row NLL
            jax.ShapeDtypeStruct((n_pad, 1), jnp.float32),       # per-row correct
        ),
        grid_spec=pltpu.PrefetchScalarGridSpec(
            num_scalar_prefetch=0,
            grid=grid,
            in_specs=[
                pl.BlockSpec((tm, d), lambda i, j: (i, 0)),   # hidden (bf16)
                pl.BlockSpec((d, tn), lambda i, j: (0, j)),   # weight (bf16)
                pl.BlockSpec((1, tn), lambda i, j: (0, j)),   # bias (f32, NEG-padded)
                pl.BlockSpec((tm, 1), lambda i, j: (i, 0)),   # gold ids
                pl.BlockSpec((tm, 1), lambda i, j: (i, 0)),   # plan mask
            ],
            out_specs=[
                pl.BlockSpec((tm, tn), lambda i, j: (i, j)),
                pl.BlockSpec((tm, 1), lambda i, j: (i, 0)),
                pl.BlockSpec((tm, 1), lambda i, j: (i, 0)),
            ],
            scratch_shapes=[
                pltpu.VMEM((tm, 1), jnp.float32),   # running max
                pltpu.VMEM((tm, 1), jnp.float32),   # running sum-exp
                pltpu.VMEM((tm, 1), jnp.float32),   # gold logit
                pltpu.VMEM((tm, 1), jnp.int32),     # running argmax
            ],
        ),
        compiler_params=pltpu.CompilerParams(
            dimension_semantics=("parallel", "arbitrary"),
            vmem_limit_bytes=_VMEM_LIMIT,
        ),
    )(h_bf, w_bf, b2, gold2, mask2)


def _call_logits(h_bf, w_bf, b2, *, tm, tn):
    n_pad, d = h_bf.shape
    v_pad = w_bf.shape[1]
    grid = (n_pad // tm, v_pad // tn)
    return pl.pallas_call(
        _lm_head_logits_kernel,
        out_shape=jax.ShapeDtypeStruct((n_pad, v_pad), jnp.float32),
        grid_spec=pltpu.PrefetchScalarGridSpec(
            num_scalar_prefetch=0,
            grid=grid,
            in_specs=[
                pl.BlockSpec((tm, d), lambda i, j: (i, 0)),
                pl.BlockSpec((d, tn), lambda i, j: (0, j)),
                pl.BlockSpec((1, tn), lambda i, j: (0, j)),
            ],
            out_specs=pl.BlockSpec((tm, tn), lambda i, j: (i, j)),
        ),
        compiler_params=pltpu.CompilerParams(
            dimension_semantics=("parallel", "parallel"),
            vmem_limit_bytes=_VMEM_LIMIT,
        ),
    )(h_bf, w_bf, b2)


# ---------------------------------------------------------------------------
# One-time parameter preparation (outside the jitted train step).
# ---------------------------------------------------------------------------
def prepare_lm_head(lm_w, lm_b):
    """Pad vocab to a multiple of 128, cast the weight to bf16 once, and pad
    the bias with -1e30 so padded vocab columns are auto-masked in-kernel."""
    d, v = lm_w.shape
    v_pad = _round_up(v, 128)
    w_bf = lm_w.astype(jnp.bfloat16)
    if v_pad != v:
        w_bf = jnp.pad(w_bf, ((0, 0), (0, v_pad - v)))
    b_pad = jnp.pad(lm_b.astype(jnp.float32), (0, v_pad - v),
                    constant_values=_NEG).reshape(1, v_pad)
    return w_bf, b_pad


# ---------------------------------------------------------------------------
# TCP head forward (the part of TCP.forward after planner_output)
# ---------------------------------------------------------------------------
@functools.partial(jax.jit,
                   static_argnames=("vocab_size", "is_test", "tm", "tn"))
def tcp_head_forward(planner_hidden, lm_w_bf, lm_b_pad, gold_ids, pl_mask, *,
                     vocab_size, is_test=False, tm=None, tn=None):
    B, T, D = planner_hidden.shape
    V = vocab_size
    v_pad = lm_w_bf.shape[1]
    N = B * T

    if tn is None:
        tn = _pick_vocab_tile(v_pad)
    assert v_pad % tn == 0, "tn must divide the padded vocab size"
    if tm is None:
        tm = _pick_row_tile(N)
    n_pad = _round_up(N, tm)

    h2 = planner_hidden.reshape(N, D).astype(jnp.bfloat16)
    if n_pad != N:
        h2 = jnp.pad(h2, ((0, n_pad - N), (0, 0)))

    if is_test:
        logits_pad = _call_logits(h2, lm_w_bf, lm_b_pad, tm=tm, tn=tn)
        if n_pad == N and v_pad == V:
            lm_logits = logits_pad.reshape(B, T, V)
        else:
            lm_logits = logits_pad[:N, :V].reshape(B, T, V)
        return {"lm_logits": lm_logits}

    gold2 = gold_ids.reshape(-1).astype(jnp.int32)
    mask2 = pl_mask.reshape(-1).astype(jnp.float32)
    if n_pad != N:
        gold2 = jnp.pad(gold2, (0, n_pad - N))
        mask2 = jnp.pad(mask2, (0, n_pad - N))
    gold2 = gold2.reshape(n_pad, 1)
    mask2 = mask2.reshape(n_pad, 1)

    logits_pad, nll, corr = _call_stats(
        h2, lm_w_bf, lm_b_pad, gold2, mask2, tm=tm, tn=tn, n_valid=N)

    # TODO(synk): training-path logits are returned in bf16 (halves the
    #             dominant HBM write); cast here if f32 logits are required.
    if n_pad == N and v_pad == V:
        lm_logits = logits_pad.reshape(B, T, V)
    else:
        lm_logits = logits_pad[:N, :V].reshape(B, T, V)

    # CrossEntropyLoss() default = mean over ALL B*T tokens (no ignore_index),
    # exactly matching the original TCP.forward.
    lm_loss = jnp.sum(nll) / N
    acc = jnp.sum(corr)
    total_tokens = jnp.sum(pl_mask.astype(jnp.float32))
    return {
        "lm_logits": lm_logits,
        "loss": lm_loss,
        "acc": acc,
        "total_tokens": total_tokens,
    }


if __name__ == "__main__":
    # Small shapes consistent with the module: batch=2, plan seq=8, embed_dim=32.
    B, T, D = 2, 8, 32
    init_std = 0.02

    key = jax.random.PRNGKey(0)
    k_h, k_w, k_b, k_g, k_m = jax.random.split(key, 5)

    def run_case(V, tn):
        planner_hidden = jax.random.normal(k_h, (B, T, D), dtype=jnp.float32)
        lm_w = init_std * jax.random.normal(k_w, (D, V), dtype=jnp.float32)
        lm_b = init_std * jax.random.normal(k_b, (V,), dtype=jnp.float32)
        gold_ids = jax.random.randint(k_g, (B, T), 0, V, dtype=jnp.int32)
        pl_mask = (jax.random.uniform(k_m, (B, T)) > 0.2).astype(jnp.float32)

        w_bf, b_pad = prepare_lm_head(lm_w, lm_b)

        out = tcp_head_forward(planner_hidden, w_bf, b_pad, gold_ids, pl_mask,
                               vocab_size=V, tn=tn)
        jax.block_until_ready(out)

        # Pure-JAX reference (same bf16-input / f32-accumulate precision).
        h2 = planner_hidden.reshape(B * T, D).astype(jnp.bfloat16)
        ref_logits = jnp.dot(h2, lm_w.astype(jnp.bfloat16),
                             preferred_element_type=jnp.float32) + lm_b
        ref_logp = jax.nn.log_softmax(ref_logits, axis=-1)
        g = gold_ids.reshape(-1)
        ref_loss = -jnp.mean(ref_logp[jnp.arange(B * T), g])
        ref_pred = jnp.argmax(ref_logits, axis=-1)
        ref_acc = jnp.sum((ref_pred == g).astype(jnp.float32) * pl_mask.reshape(-1))
        ref_tot = jnp.sum(pl_mask)

        got_logits = out["lm_logits"].astype(jnp.float32).reshape(B * T, V)
        assert jnp.allclose(got_logits, ref_logits, atol=5e-3, rtol=1e-2), "logits"
        assert jnp.allclose(out["loss"], ref_loss, atol=1e-3, rtol=1e-3), "loss"
        assert jnp.allclose(out["acc"], ref_acc), "acc"
        assert jnp.allclose(out["total_tokens"], ref_tot), "total_tokens"

        # is_test path (f32 logits only, as in the original module).
        out_t = tcp_head_forward(planner_hidden, w_bf, b_pad, gold_ids, pl_mask,
                                 vocab_size=V, is_test=True, tn=tn)
        jax.block_until_ready(out_t)
        assert set(out_t.keys()) == {"lm_logits"}
        assert jnp.allclose(out_t["lm_logits"].reshape(B * T, V), ref_logits,
                            atol=2e-3, rtol=1e-3), "test logits"

    # Aligned vocab (no padding; tn=256 -> 2 vocab tiles exercise online LSE).
    run_case(V=512, tn=256)
    # Non-aligned vocab (exercises the NEG-padded bias masking + output slice).
    run_case(V=300, tn=None)

    print("KERNEL_OK")
</pallas_src>

<mosaic_0001>
module attributes {stable_mosaic.version = 11 : i64} {
  func.func @_lm_head_stats_kernel(%arg0: i32, %arg1: i32, %arg2: memref<16x32xbf16, #tpu.memory_space<vmem>>, %arg3: memref<32x256xbf16, #tpu.memory_space<vmem>>, %arg4: memref<1x256xf32, #tpu.memory_space<vmem>>, %arg5: memref<16x1xi32, #tpu.memory_space<vmem>>, %arg6: memref<16x1xf32, #tpu.memory_space<vmem>>, %arg7: memref<16x256xbf16, #tpu.memory_space<vmem>>, %arg8: memref<16x1xf32, #tpu.memory_space<vmem>>, %arg9: memref<16x1xf32, #tpu.memory_space<vmem>>, %arg10: memref<16x1xf32, #tpu.memory_space<vmem>>, %arg11: memref<16x1xf32, #tpu.memory_space<vmem>>, %arg12: memref<16x1xf32, #tpu.memory_space<vmem>>, %arg13: memref<16x1xi32, #tpu.memory_space<vmem>>) attributes {dimension_semantics = [#tpu.dimension_semantics<parallel>, #tpu.dimension_semantics<arbitrary>], iteration_bounds = array<i64: 1, 2>, scalar_prefetch = 0 : i64, scratch_operands = 4 : i64, tpu.core_type = #tpu.core_type<tc>, window_params = [{transform_indices = @transform_0, window_bounds = array<i64: 16, 32>}, {transform_indices = @transform_1, window_bounds = array<i64: 32, 256>}, {transform_indices = @transform_2, window_bounds = array<i64: 1, 256>}, {transform_indices = @transform_3, window_bounds = array<i64: 16, 1>}, {transform_indices = @transform_4, window_bounds = array<i64: 16, 1>}, {transform_indices = @transform_5, window_bounds = array<i64: 16, 256>}, {transform_indices = @transform_6, window_bounds = array<i64: 16, 1>}, {transform_indices = @transform_7, window_bounds = array<i64: 16, 1>}]} {
    %c0_i32 = arith.constant 0 : i32
    %0 = arith.cmpi eq, %arg1, %c0_i32 : i32
    %1 = arith.extui %0 : i1 to i32
    %c0_i32_0 = arith.constant 0 : i32
    %2 = arith.cmpi ne, %1, %c0_i32_0 : i32
    scf.if %2 {
      %cst_32 = arith.constant -1.000000e+30 : f32
      %54 = vector.broadcast %cst_32 : f32 to vector<16x1xf32>
      %c0_33 = arith.constant 0 : index
      %c0_34 = arith.constant 0 : index
      %55 = vector.load %arg10[%c0_33, %c0_34] : memref<16x1xf32, #tpu.memory_space<vmem>>, vector<16x1xf32>
      tpu.vector_store %arg10[%c0_33, %c0_34], %54 {strides = array<i32>} : memref<16x1xf32, #tpu.memory_space<vmem>>, vector<16x1xf32>,
      %cst_35 = arith.constant 0.000000e+00 : f32
      %56 = vector.broadcast %cst_35 : f32 to vector<16x1xf32>
      %c0_36 = arith.constant 0 : index
      %c0_37 = arith.constant 0 : index
      %57 = vector.load %arg11[%c0_36, %c0_37] : memref<16x1xf32, #tpu.memory_space<vmem>>, vector<16x1xf32>
      tpu.vector_store %arg11[%c0_36, %c0_37], %56 {strides = array<i32>} : memref<16x1xf32, #tpu.memory_space<vmem>>, vector<16x1xf32>,
      %cst_38 = arith.constant 0.000000e+00 : f32
      %58 = vector.broadcast %cst_38 : f32 to vector<16x1xf32>
      %c0_39 = arith.constant 0 : index
      %c0_40 = arith.constant 0 : index
      %59 = vector.load %arg12[%c0_39, %c0_40] : memref<16x1xf32, #tpu.memory_space<vmem>>, vector<16x1xf32>
      tpu.vector_store %arg12[%c0_39, %c0_40], %58 {strides = array<i32>} : memref<16x1xf32, #tpu.memory_space<vmem>>, vector<16x1xf32>,
      %c-1_i32 = arith.constant -1 : i32
      %60 = vector.broadcast %c-1_i32 : i32 to vector<16x1xi32>
      %c0_41 = arith.constant 0 : index
      %c0_42 = arith.constant 0 : index
      %61 = vector.load %arg13[%c0_41, %c0_42] : memref<16x1xi32, #tpu.memory_space<vmem>>, vector<16x1xi32>
      tpu.vector_store %arg13[%c0_41, %c0_42], %60 {strides = array<i32>} : memref<16x1xi32, #tpu.memory_space<vmem>>, vector<16x1xi32>,
    } else {
    }
    %c0 = arith.constant 0 : index
    %c0_1 = arith.constant 0 : index
    %3 = vector.load %arg2[%c0, %c0_1] : memref<16x32xbf16, #tpu.memory_space<vmem>>, vector<16x32xbf16>
    %c0_2 = arith.constant 0 : index
    %c0_3 = arith.constant 0 : index
    %4 = vector.load %arg3[%c0_2, %c0_3] : memref<32x256xbf16, #tpu.memory_space<vmem>>, vector<32x256xbf16>
    %cst = arith.constant dense<0.000000e+00> : vector<16x256xf32>
    %5 = tpu.matmul %3, %4, %cst {dimension_numbers = #tpu.dot_dimension_numbers<[1], [0], [0], [1], [0, 0, 1, 1], [], []>} : vector<16x32xbf16>, vector<32x256xbf16>, vector<16x256xf32> -> vector<16x256xf32>
    %c0_4 = arith.constant 0 : index
    %c0_5 = arith.constant 0 : index
    %6 = vector.load %arg4[%c0_4, %c0_5] : memref<1x256xf32, #tpu.memory_space<vmem>>, vector<1x256xf32>
    %7 = vector.broadcast %6 : vector<1x256xf32> to vector<16x256xf32>
    %8 = arith.addf %5, %7 : vector<16x256xf32>
    %9 = arith.truncf %8 : vector<16x256xf32> to vector<16x256xbf16>
    %c0_6 = arith.constant 0 : index
    %c0_7 = arith.constant 0 : index
    %10 = vector.load %arg7[%c0_6, %c0_7] : memref<16x256xbf16, #tpu.memory_space<vmem>>, vector<16x256xbf16>
    tpu.vector_store %arg7[%c0_6, %c0_7], %9 {strides = array<i32>} : memref<16x256xbf16, #tpu.memory_space<vmem>>, vector<16x256xbf16>,
    %11 = tpu.iota {dimensions = array<i32: 1>} : vector<16x256xi32>
    %c256_i32 = arith.constant 256 : i32
    %12 = arith.muli %arg1, %c256_i32 : i32
    %13 = vector.broadcast %12 : i32 to vector<16x256xi32>
    %14 = arith.addi %11, %13 : vector<16x256xi32>
    %cst_8 = arith.constant dense<0xFF800000> : vector<16xf32>
    %15 = vector.multi_reduction <maximumf>, %8, %cst_8 [1] : vector<16x256xf32> to vector<16xf32>
    %16 = vector.shape_cast %15 : vector<16xf32> to vector<16x1xf32>
    %17 = vector.broadcast %16 : vector<16x1xf32> to vector<16x256xf32>
    %18 = arith.cmpf oeq, %8, %17 : vector<16x256xf32>
    %c1073741824_i32 = arith.constant 1073741824 : i32
    %19 = vector.broadcast %c1073741824_i32 : i32 to vector<16x256xi32>
    %20 = arith.select %18, %14, %19 : vector<16x256xi1>, vector<16x256xi32>
    %cst_9 = arith.constant dense<2147483647> : vector<16xi32>
    %21 = vector.multi_reduction <minsi>, %20, %cst_9 [1] : vector<16x256xi32> to vector<16xi32>
    %22 = vector.shape_cast %21 : vector<16xi32> to vector<16x1xi32>
    %c0_10 = arith.constant 0 : index
    %c0_11 = arith.constant 0 : index
    %23 = vector.load %arg10[%c0_10, %c0_11] : memref<16x1xf32, #tpu.memory_space<vmem>>, vector<16x1xf32>
    %24 = arith.maximumf %23, %16 : vector<16x1xf32>
    %25 = arith.cmpf ogt, %16, %23 : vector<16x1xf32>
    %c0_12 = arith.constant 0 : index
    %c0_13 = arith.constant 0 : index
    %26 = vector.load %arg13[%c0_12, %c0_13] : memref<16x1xi32, #tpu.memory_space<vmem>>, vector<16x1xi32>
    %27 = arith.select %25, %22, %26 : vector<16x1xi1>, vector<16x1xi32>
    %c0_14 = arith.constant 0 : index
    %c0_15 = arith.constant 0 : index
    %28 = vector.load %arg13[%c0_14, %c0_15] : memref<16x1xi32, #tpu.memory_space<vmem>>, vector<16x1xi32>
    tpu.vector_store %arg13[%c0_14, %c0_15], %27 {strides = array<i32>} : memref<16x1xi32, #tpu.memory_space<vmem>>, vector<16x1xi32>,
    %c0_16 = arith.constant 0 : index
    %c0_17 = arith.constant 0 : index
    %29 = vector.load %arg11[%c0_16, %c0_17] : memref<16x1xf32, #tpu.memory_space<vmem>>, vector<16x1xf32>
    %30 = arith.subf %23, %24 : vector<16x1xf32>
    %31 = math.exp %30 : vector<16x1xf32>
    %32 = arith.mulf %29, %31 : vector<16x1xf32>
    %33 = vector.broadcast %24 : vector<16x1xf32> to vector<16x256xf32>
    %34 = arith.subf %8, %33 : vector<16x256xf32>
    %35 = math.exp %34 : vector<16x256xf32>
    %cst_18 = arith.constant dense<0.000000e+00> : vector<16xf32>
    %36 = vector.multi_reduction <add>, %35, %cst_18 [1] : vector<16x256xf32> to vector<16xf32>
    %37 = vector.shape_cast %36 : vector<16xf32> to vector<16x1xf32>
    %38 = arith.addf %32, %37 : vector<16x1xf32>
    %c0_19 = arith.constant 0 : index
    %c0_20 = arith.constant 0 : index
    %39 = vector.load %arg11[%c0_19, %c0_20] : memref<16x1xf32, #tpu.memory_space<vmem>>, vector<16x1xf32>
    tpu.vector_store %arg11[%c0_19, %c0_20], %38 {strides = array<i32>} : memref<16x1xf32, #tpu.memory_space<vmem>>, vector<16x1xf32>,
    %c0_21 = arith.constant 0 : index
    %c0_22 = arith.constant 0 : index
    %40 = vector.load %arg10[%c0_21, %c0_22] : memref<16x1xf32, #tpu.memory_space<vmem>>, vector<16x1xf32>
    tpu.vector_store %arg10[%c0_21, %c0_22], %24 {strides = array<i32>} : memref<16x1xf32, #tpu.memory_space<vmem>>, vector<16x1xf32>,
    %c0_23 = arith.constant 0 : index
    %c0_24 = arith.constant 0 : index
    %41 = vector.load %arg5[%c0_23, %c0_24] : memref<16x1xi32, #tpu.memory_space<vmem>>, vector<16x1xi32>
    %c0_25 = arith.constant 0 : index
    %c0_26 = arith.constant 0 : index
    %42 = vector.load %arg12[%c0_25, %c0_26] : memref<16x1xf32, #tpu.memory_space<vmem>>, vector<16x1xf32>
    %43 = vector.broadcast %41 : vector<16x1xi32> to vector<16x256xi32>
    %44 = arith.cmpi eq, %14, %43 : vector<16x256xi32>
    %cst_27 = arith.constant 0.000000e+00 : f32
    %45 = vector.broadcast %cst_27 : f32 to vector<16x256xf32>
    %46 = arith.select %44, %8, %45 : vector<16x256xi1>, vector<16x256xf32>
    %cst_28 = arith.constant dense<0.000000e+00> : vector<16xf32>
    %47 = vector.multi_reduction <add>, %46, %cst_28 [1] : vector<16x256xf32> to vector<16xf32>
    %48 = vector.shape_cast %47 : vector<16xf32> to vector<16x1xf32>
    %49 = arith.addf %42, %48 : vector<16x1xf32>
    %c0_29 = arith.constant 0 : index
    %c0_30 = arith.constant 0 : index
    %50 = vector.load %arg12[%c0_29, %c0_30] : memref<16x1xf32, #tpu.memory_space<vmem>>, vector<16x1xf32>
    tpu.vector_store %arg12[%c0_29, %c0_30], %49 {strides = array<i32>} : memref<16x1xf32, #tpu.memory_space<vmem>>, vector<16x1xf32>,
    %c1_i32 = arith.constant 1 : i32
    %51 = arith.cmpi eq, %arg1, %c1_i32 : i32
    %52 = arith.extui %51 : i1 to i32
    %c0_i32_31 = arith.constant 0 : i32
    %53 = arith.cmpi ne, %52, %c0_i32_31 : i32
    scf.if %53 {
      %54 = tpu.iota {dimensions = array<i32: 0>} : vector<16x1xi32>
      %c16_i32 = arith.constant 16 : i32
      %55 = arith.muli %arg0, %c16_i32 : i32
      %56 = vector.broadcast %55 : i32 to vector<16x1xi32>
      %57 = arith.addi %54, %56 : vector<16x1xi32>
      %c16_i32_32 = arith.constant 16 : i32
      %58 = vector.broadcast %c16_i32_32 : i32 to vector<16x1xi32>
      %59 = arith.cmpi slt, %57, %58 : vector<16x1xi32>
      %60 = arith.extui %59 : vector<16x1xi1> to vector<16x1xi32>
      %61 = arith.sitofp %60 : vector<16x1xi32> to vector<16x1xf32>
      %c0_33 = arith.constant 0 : index
      %c0_34 = arith.constant 0 : index
      %62 = vector.load %arg10[%c0_33, %c0_34] : memref<16x1xf32, #tpu.memory_space<vmem>>, vector<16x1xf32>
      %c0_35 = arith.constant 0 : index
      %c0_36 = arith.constant 0 : index
      %63 = vector.load %arg11[%c0_35, %c0_36] : memref<16x1xf32, #tpu.memory_space<vmem>>, vector<16x1xf32>
      %64 = math.log %63 : vector<16x1xf32>
      %65 = arith.addf %62, %64 : vector<16x1xf32>
      %c0_37 = arith.constant 0 : index
      %c0_38 = arith.constant 0 : index
      %66 = vector.load %arg12[%c0_37, %c0_38] : memref<16x1xf32, #tpu.memory_space<vmem>>, vector<16x1xf32>
      %67 = arith.subf %65, %66 : vector<16x1xf32>
      %68 = arith.mulf %67, %61 : vector<16x1xf32>
      %c0_39 = arith.constant 0 : index
      %c0_40 = arith.constant 0 : index
      %69 = vector.load %arg8[%c0_39, %c0_40] : memref<16x1xf32, #tpu.memory_space<vmem>>, vector<16x1xf32>
      tpu.vector_store %arg8[%c0_39, %c0_40], %68 {strides = array<i32>} : memref<16x1xf32, #tpu.memory_space<vmem>>, vector<16x1xf32>,
      %c0_41 = arith.constant 0 : index
      %c0_42 = arith.constant 0 : index
      %70 = vector.load %arg13[%c0_41, %c0_42] : memref<16x1xi32, #tpu.memory_space<vmem>>, vector<16x1xi32>
      %c0_43 = arith.constant 0 : index
      %c0_44 = arith.constant 0 : index
      %71 = vector.load %arg5[%c0_43, %c0_44] : memref<16x1xi32, #tpu.memory_space<vmem>>, vector<16x1xi32>
      %72 = arith.cmpi eq, %70, %71 : vector<16x1xi32>
      %73 = arith.extui %72 : vector<16x1xi1> to vector<16x1xi32>
      %74 = arith.sitofp %73 : vector<16x1xi32> to vector<16x1xf32>
      %c0_45 = arith.constant 0 : index
      %c0_46 = arith.constant 0 : index
      %75 = vector.load %arg6[%c0_45, %c0_46] : memref<16x1xf32, #tpu.memory_space<vmem>>, vector<16x1xf32>
      %76 = arith.mulf %74, %75 : vector<16x1xf32>
      %77 = arith.mulf %76, %61 : vector<16x1xf32>
      %c0_47 = arith.constant 0 : index
      %c0_48 = arith.constant 0 : index
      %78 = vector.load %arg9[%c0_47, %c0_48] : memref<16x1xf32, #tpu.memory_space<vmem>>, vector<16x1xf32>
      tpu.vector_store %arg9[%c0_47, %c0_48], %77 {strides = array<i32>} : memref<16x1xf32, #tpu.memory_space<vmem>>, vector<16x1xf32>,
    } else {
    }
    return
  }
  func.func @transform_0(%arg0: i32, %arg1: i32) -> (i32, i32) {
    %c0_i32 = arith.constant 0 : i32
    %c0_i32_0 = arith.constant 0 : i32
    return %arg0, %c0_i32 : i32, i32
  }
  func.func @transform_1(%arg0: i32, %arg1: i32) -> (i32, i32) {
    %c0_i32 = arith.constant 0 : i32
    %c0_i32_0 = arith.constant 0 : i32
    return %c0_i32, %arg1 : i32, i32
  }
  func.func @transform_2(%arg0: i32, %arg1: i32) -> (i32, i32) {
    %c0_i32 = arith.constant 0 : i32
    %c0_i32_0 = arith.constant 0 : i32
    return %c0_i32, %arg1 : i32, i32
  }
  func.func @transform_3(%arg0: i32, %arg1: i32) -> (i32, i32) {
    %c0_i32 = arith.constant 0 : i32
    %c0_i32_0 = arith.constant 0 : i32
    return %arg0, %c0_i32 : i32, i32
  }
  func.func @transform_4(%arg0: i32, %arg1: i32) -> (i32, i32) {
    %c0_i32 = arith.constant 0 : i32
    %c0_i32_0 = arith.constant 0 : i32
    return %arg0, %c0_i32 : i32, i32
  }
  func.func @transform_5(%arg0: i32, %arg1: i32) -> (i32, i32) {
    %c0_i32 = arith.constant 0 : i32
    return %arg0, %arg1 : i32, i32
  }
  func.func @transform_6(%arg0: i32, %arg1: i32) -> (i32, i32) {
    %c0_i32 = arith.constant 0 : i32
    %c0_i32_0 = arith.constant 0 : i32
    return %arg0, %c0_i32 : i32, i32
  }
  func.func @transform_7(%arg0: i32, %arg1: i32) -> (i32, i32) {
    %c0_i32 = arith.constant 0 : i32
    %c0_i32_0 = arith.constant 0 : i32
    return %arg0, %c0_i32 : i32, i32
  }
}

</mosaic_0001>

<bundles_post_ra>
// kernel: tcp_head_forward.1
= control target key start
LH: loop header
LB: loop body
LE: loop exit
PB: predicated region body
PF: predicated region fallthrough
CT: control target
= control target key end

     0   :  { %13 = vsyncpa [#allocation7], 0  ;;  %s1550_s0 = inlined_call_operand.vmem [shape: bf16[16,32], index: 0, kind: input, shape index: {}]   ;;  %s1551_s1 = inlined_call_operand.hbm [shape: bf16[32,512], index: 1, kind: input, shape index: {}]   ;;  %s1552_s2 = inlined_call_operand.vmem [shape: f32[1,512], index: 2, kind: input, shape index: {}]   ;;  %s1553_s3 = inlined_call_operand.vmem [shape: s32[16,1], index: 3, kind: input, shape index: {}]   ;;  %s1554_s4 = inlined_call_operand.vmem [shape: f32[16,1], index: 4, kind: input, shape index: {}]   ;;  %s1555_s5 = inlined_call_operand.hbm [shape: bf16[16,512], index: 5, kind: output, shape index: {0}]   ;;  %s1556_s6 = inlined_call_operand.vmem [shape: f32[16,1], index: 6, kind: output, shape index: {1}]   ;;  %s1557_s7 = inlined_call_operand.vmem [shape: f32[16,1], index: 7, kind: output, shape index: {2}]  }
   0x1   :  { %15 = vsyncpa [#allocation7 + $0x1], 0 }
   0x2   :  { %16 = vsyncpa [#allocation8], 0 }
   0x3   :  { %18 = vsyncpa [#allocation8 + $0x1], 0  ;;  %s1253_s24 = smov 0   ;;  %s1255_s25 = smov 0  }
   0x4   :  { %s1257_s26 = smov 0   ;;  %s1259_s27 = smov 0  }
   0x5   :  { %s1261_s28 = smov 0   ;;  %s1263_s29 = smov 0  }
   0x6 LB: > { %1560 = sst [smem:[#allocation12_spill]] %s1194_s28  ;;  %s952_s30 = sadd.s32 4294967295, %s1198_s29   ;;  %s1198_s29 = sphi %s1263_s29, %s24_s29   ;;  %s1194_s28 = sphi %s1261_s28, %s1569_s28   ;;  %s1190_s27 = sphi %s1259_s27, %s1568_s27   ;;  %s1186_s26 = sphi %s1257_s26, %s1572_s26   ;;  %s1182_s25 = sphi %s1255_s25, %s1571_s25   ;;  %s1178_s24 = sphi %s1253_s24, %s1570_s24  }
   0x7   : > { %s953_s8 = sadd.s32 4294967294, %s1198_s29   ;;  %s33_s9 = sadd.s32 1, %s1194_s28 }
   0x8   : > { %s69_s10 = sadd.s32 1, %s1186_s26  ;;  %p34_p0 = scmp.ge.s32.totalorder %s33_s9, 2 }
   0x9   : > { %p76_p1 = scmp.ne.s32.totalorder %s1186_s26, %s1182_s25  ;;  %p77_p2 = scmp.eq.s32.totalorder %s1198_s29, 0 }
   0xa   : > { %p82_p3 = scmp.ne.s32.totalorder %s1182_s25, %s1178_s24  ;;  %s1574_s9 = smov (%p34_p0, %s33_s9), 0 }
   0xb   : > { %1561 = sst [smem:[#allocation13_spill]] %s1574_s9  ;;  %p1294_p4 = por %p77_p2, %p76_p1 }
   0xc   : > { %p83_p5 = scmp.eq.s32.totalorder %s952_s30, 0  ;;  %s66_s12 = ssub.s32 %s1194_s28, %s1574_s9 }
   0xd   : > { %p186_p6 = scmp.eq.s32.totalorder %s952_s30, 1  ;;  %p67_p7 = scmp.eq.s32.totalorder %s66_s12, 0 }
   0xe   : > { %p1300_p8 = por %p83_p5, %p82_p3  ;;  %p192_p10 = scmp.eq.s32.totalorder %s953_s8, 1 }
   0xf   : > { %p1304_p9 = por %p186_p6, %p76_p1  ;;  %p1004_p13 = scmp.lt.s32.totalorder %s1198_s29, 2 }
  0x10   : > { %s1309_s15 = scalar_select %p67_p7, %s1186_s26, %s69_s10  }
  0x11   : > { %p1311_p11 = por %p192_p10, %p82_p3  ;;  %s291_s17 = sand.u32 1, %s1186_s26  }
  0x12   : > { %s959_s18 = sshll.u32 %s291_s17, 5  ;;  %s988_s19 = sshll.u32 %s1194_s28, 7 }
  0x13   : > { %s301_s22 = scalar_lea.hbm %s1551_s1, %s988_s19  ;;  %s295_s23 = scalar_lea.vmem [#allocation6], %s959_s18 }
  0x14   : > { %s302_s30 = sshll.u32 %s295_s23, 4  ;;  %p1324_p0 = pnand %p1004_p13, %p1294_p4  ;;  %s303_s30 = int_to_ptr.vmem [resolvable:$true] %s302_s30 }
  0x15   : > { %s292_s10 = scalar_lea.sflag [#allocation7], %s291_s17  ;;  %s1103_s12 = scalar_lea.vmem %s303_s30, 512 }
  0x16   : > { %p1092_p1 = pneg %p1324_p0  ;;  %p1104_p2 = scmp.ne.s32.totalorder %s303_s30, %s1103_s12 }
  0x17   : > { %s1200_s9 = smov [#allocation6]  }
  0x18   : > { %p1106_p3 = pnand %p1104_p2, %p1092_p1  ;;  %s1108_s28 = sshll.u32 %s1200_s9, 4  ;;  %s1109_s28 = int_to_ptr.vmem [resolvable:$false] %s1108_s28 }
  0x19   : > { %s1110_s19 = scalar_lea.vmem %s1109_s28, 1024  ;;  %p1111_p6 = scmp.lt.s32.totalorder %s303_s30, %s1109_s28 }
  0x1a   : > { %p1107_p5 = pneg %p1106_p3  ;;  %p1112_p7 = scmp.lt.s32.totalorder %s1110_s19, %s1103_s12 }
  0x1c   : > { %p1113_p10 = por %p1112_p7, %p1111_p6 }
  0x1e   : > { %p1114_p12 = pnand %p1113_p10, %p1107_p5 }
  0x20   : > { %1117 = shalt.err (!%p1114_p12)
}
  0x21   : > { %s1201_s11 = smov 256   ;;  %s1202_s17 = smov 128  }
  0x22   : > { %s1203_s18 = smov 8   ;;  %p962_p4 = scmp.ge.s32.totalorder %s1198_s29, 1 }
  0x23   : > { %999 = dma.hbm_to_vmem [thread:$0]  (!%p1324_p0), %s301_s22, 512, %s303_s30, %s292_s10, %s1201_s11, %s1202_s17, %s1203_s18  }
  0x24   : > { %p318_p13 = scmp.lt.s32.totalorder %s1198_s29, 3 }
  0x26   : > { %p319_p1 = pnand %p962_p4, %p318_p13 }
  0x27   : > { %s1335_s9 = sand.u32 (!%p319_p1), 1, %s1182_s25  }
  0x28   : > { %322 = sbr.rel (%p319_p1) target bundleno = 784 (0x310), region = 40  ;;  %s963_s28 = sshll.u32 (!%p319_p1), %s1335_s9, 5 }
  0x29   : > { %s325_s20 = scalar_lea.sflag (!%p319_p1), [#allocation7], %s1335_s9  ;;  %s1339_s21 = scalar_lea.vmem (!%p319_p1), [#allocation6], %s963_s28 }
  0x2d   : > { %1169 = dma.done.wait (%p1300_p8), %s325_s20, 512  }
  0x2e   : > { %1171 = vsyncadd (%p1300_p8), %s325_s20, 4294966784  ;;  %s964_s22 = sshll.u32 %s1335_s9, 4  ;;  %s965_s23 = sshll.u32 %s1190_s27, 1 }
  0x2f   : > { %p396_p12 = scmp.lt.s32.totalorder %s965_s23, 3  ;;  %s1353_s12 = scalar_lea.vmem [#allocation9], %s964_s22 }
  0x30   : > { %p966_p0 = scmp.ne.s32.totalorder %s1190_s27, 0 }
  0x31   : > { %s1576_s23 = smov (!%p396_p12, %s965_s23), 3 }
  0x32   : > { %s398_s10 = scalar_lea.vmem %s1552_s2, %s1576_s23  ;;  %430 = sbr.rel (%p966_p0) target bundleno = 60 (0x3c), region = 48 }
  0x37   : > { %vm431_vm0 = vcmask 7168   ;;  %v1204_v0 = vmov -1e+30   ;;  %v1205_v1 = vmov 0.0   ;;  %v1206_v2 = vmov 4294967295  }
  0x38   : > { %432 = vst.msk [vmem:[#allocation2] sm:$0xff] %vm431_vm0, %v1204_v0  ;;  %433 = vst.msk [vmem:[#allocation2 + $0x8] sm:$0xff] %vm431_vm0, %v1204_v0 }
  0x39   : > { %434 = vst.msk [vmem:[#allocation3] sm:$0xff] %vm431_vm0, %v1205_v1  ;;  %435 = vst.msk [vmem:[#allocation3 + $0x8] sm:$0xff] %vm431_vm0, %v1205_v1 }
  0x3a   : > { %436 = vst.msk [vmem:[#allocation4] sm:$0xff] %vm431_vm0, %v1205_v1  ;;  %437 = vst.msk [vmem:[#allocation4 + $0x8] sm:$0xff] %vm431_vm0, %v1205_v1 }
  0x3b   : > { %438 = vst.msk [vmem:[#allocation5] sm:$0xff] %vm431_vm0, %v1206_v2  ;;  %439 = vst.msk [vmem:[#allocation5 + $0x8] sm:$0xff] %vm431_vm0, %v1206_v2 }
  0x3c PF: > { %v1067_v3 = vld [vmem:[%s1339_s21 + $0x14] ss:$8 sps:$4 sm:$0xff]   ;;  %v1069_v4 = vld [vmem:[%s1339_s21 + $0x10] ss:$8 sps:$4 sm:$0xff]   ;;  %v1207_v5 = vmov 0   ;;  %v1073_v8 = vld [vmem:[%s1550_s0] sm:$0xff]   ;;  %v448_v9 = vlaneseq }
  0x3d   : > { %519 = vmatprep.mubr.bf16.mxu0 %v1207_v5  ;;  %1065 = vset.pattern.permute.xlu1 %v1207_v5  ;;  %v1070_v6 = vld [vmem:[%s1339_s21 + $0x4] ss:$8 sps:$4 sm:$0xff]   ;;  %v1072_v7 = vld [vmem:[%s1339_s21] ss:$8 sps:$4 sm:$0xff]   ;;  %vm483_vm1 = vcmask 261120   ;;  %s975_s18 = sshll.u32 %s1190_s27, 8 }
  0x3e   : > { %499 = vmatprep.subr.bf16.mxu0 %v1067_v3  ;;  %1066 = vset.pattern.permute.xlu0 %v1207_v5  ;;  %v449_v10 = vshrl.u32 %v448_v9, 7  ;;  %v446_v13 = vld [vmem:[%s398_s10] sm:$0x3]  ;;  %v545_v28 = vand.u32 127, %v448_v9  ;;  %v548_v30 = vstv %s975_s18  ;;  %vm607_vm2 = vcmask 7168   ;;  %v655_v52 = vld [vmem:[%s1553_s3 + $0x8] sm:$0xff] }
  0x3f   : > { %500 = vmatpush1.bf16.msra.mxu0 %v1069_v4  ;;  %v1389_v32 = vld [vmem:[#allocation2] sm:$0xff]  ;;  %v1412_v39 = vld [vmem:[#allocation2 + $0x8] sm:$0xff]  ;;  %p976_p8 = scmp.ne.s32.totalorder %s1190_s27, 1 }
  0x40   : > { %501 = vmatprep.subr.bf16.mxu0 %v1070_v6  ;;  %v450_v11 = vsub.s32 0, %v449_v10  ;;  %v454_v12 = vsub.s32 1, %v449_v10  ;;  %v546_v29 = vadd.s32 128, %v545_v28  ;;  %v1387_v31 = vadd.s32 %v548_v30, %v545_v28  ;;  %v654_v46 = vld [vmem:[%s1553_s3] sm:$0xff] }
  0x42   : > { %v451_v14 = vrot.slane %v446_v13, %v450_v11  ;;  %v455_v15 = vrot.slane %v446_v13, %v454_v12  ;;  %v1391_v33 = vadd.s32 %v548_v30, %v546_v29 }
  0x43   : > { %502 = vmatpush1.bf16.msra.mxu0 %v1072_v7 }
  0x46   : > { %972 = vmatmul.mubr.msk.bf16.vlgmr.msra.gmra.mxu0 %vm483_vm1, %v1073_v8 }
 0x106   : > { %v521_v16 = vpop.f32.mrf.mxu0 }
 0x107   : > { %v1368_v18 = vadd.f32 %v521_v16, %v451_v14 }
 0x108   : > { %v523_v17 = vpop.f32.mrf.mxu0 }
 0x109   : > { %v1370_v19 = vadd.f32 %v523_v17, %v455_v15 }
 0x10a   : > { %v525_v20 = vpop.f32.mrf.mxu0 }
 0x10b   : > { %v989_v21 = vpack.c.bf16 %v1370_v19, %v1368_v18  ;;  %v551_v22 = vmax.f32 %v1368_v18, %v1370_v19  ;;  %v1377_v24 = vadd.f32 %v525_v20, %v451_v14 }
 0x10c   : > { %v527_v23 = vpop.f32.mrf.mxu0 }
 0x10d   : > { %542 = vst [vmem:[%s1353_s12] sm:$0xff] %v989_v21  ;;  %v1379_v25 = vadd.f32 %v527_v23, %v455_v15  ;;  %552 = vmax.xlane.f32.xlu0 %v551_v22 }
 0x10f   : > { %v990_v26 = vpack.c.bf16 %v1379_v25, %v1377_v24  ;;  %v554_v27 = vmax.f32 %v1377_v24, %v1379_v25 }
 0x111   : > { %543 = vst [vmem:[%s1353_s12 + $0x8] sm:$0xff] %v990_v26  ;;  %555 = vmax.xlane.f32.xlu0 %v554_v27  ;;  %v610_v26 = vld [vmem:[#allocation3] sm:$0xff] }
 0x196   : > { %v1393_v34 = vpop.xlane.xlu0 %552 }
 0x197   : > { %vm557_vm3 = vcmp.eq.f32.partialorder %v1368_v18, %v1393_v34  ;;  %vm558_vm4 = vcmp.eq.f32.partialorder %v1370_v19, %v1393_v34  ;;  %vm601_vm5 = vcmp.gt.f32.partialorder %v1393_v34, %v1389_v32  ;;  %v1403_v35 = vmax.f32 %v1389_v32, %v1393_v34 }
 0x198   : > { %v561_v36 = vsel %vm557_vm3, %v1387_v31, 1073741824  ;;  %v562_v37 = vsel %vm558_vm4, %v1391_v33, 1073741824 }
 0x199   : > { %622 = vperm.xlu1 %1065, %v1403_v35   ;;  %v612_v38 = vsub.f32 %v1389_v32, %v1403_v35  ;;  %652 = vst.msk [vmem:[#allocation2] sm:$0xff] %vm607_vm2, %v1403_v35  ;;  %vm565_vm6 = vcmp.lt.s32.totalorder %v561_v36, %v562_v37  ;;  %v657_v32 = vld [vmem:[#allocation4 + $0x8] sm:$0xff] }
 0x19a   : > { %v1414_v40 = vpop.xlane.xlu0 %555  ;;  %v566_v41 = vsel %vm565_vm6, %v561_v36, %v562_v37  ;;  %v603_v36 = vld [vmem:[#allocation5] sm:$0xff] }
 0x19b   : > { %v1418_v42 = vmax.f32 %v1412_v39, %v1414_v40  ;;  %v568_v43 = vshra.s32 %v566_v41, 16  ;;  %vm559_vm7 = vcmp.eq.f32.partialorder %v1377_v24, %v1414_v40  ;;  %vm560_vm8 = vcmp.eq.f32.partialorder %v1379_v25, %v1414_v40 }
 0x19c   : > { %v563_v47 = vsel %vm559_vm7, %v1387_v31, 1073741824  ;;  %v564_v48 = vsel %vm560_vm8, %v1391_v33, 1073741824  ;;  %v567_v1 = vand.u32 65535, %v566_v41  ;;  %vm602_vm0 = vcmp.gt.f32.partialorder %v1414_v40, %v1412_v39 }
 0x19d   : > { %627 = vperm.xlu1 %1065, %v1418_v42   ;;  %v613_v44 = vsub.f32 %v1412_v39, %v1418_v42  ;;  %653 = vst.msk [vmem:[#allocation2 + $0x8] sm:$0xff] %vm607_vm2, %v1418_v42  ;;  %v570_v45 = vcvt.s32.f32 %v568_v43  ;;  %vm581_vm9 = vcmp.lt.s32.totalorder %v563_v47, %v564_v48 }
 0x19e   : > { %v582_v49 = vsel %vm581_vm9, %v563_v47, %v564_v48  ;;  %v569_v4 = vcvt.s32.f32 %v567_v1 }
 0x19f   : > { %571 = vmin.xlane.f32.xlu0 %v570_v45  ;;  %v584_v50 = vshra.s32 %v582_v49, 16  ;;  %v583_v13 = vand.u32 65535, %v582_v49  ;;  %v616_v22 = vmul.f32 1.442695, %v613_v44  ;;  %v656_v44 = vld [vmem:[#allocation4] sm:$0xff] }
 0x1a1   : > { %v586_v51 = vcvt.s32.f32 %v584_v50  ;;  %v585_v15 = vcvt.s32.f32 %v583_v13 }
 0x1b5   : > { %659 = vperm.xlu0 %1066, %v654_v46  }
 0x1c1   : > { %587 = vmin.xlane.f32.xlu1 %v586_v51 }
 0x1d2   : > { %662 = vperm.xlu1 %1065, %v655_v52  }
 0x214   : > { %v623_v53 = vpop.permute.xlu1 %622 }
 0x215   : > { %v630_v54 = vsub.f32 %v1368_v18, %v623_v53  ;;  %v631_v55 = vsub.f32 %v1370_v19, %v623_v53 }
 0x217   : > { %v634_v56 = vmul.f32 1.442695, %v630_v54  ;;  %v636_v57 = vmul.f32 1.442695, %v631_v55 }
 0x218   : > { %v628_v58 = vpop.permute.xlu1 %627 }
 0x219   : > { %1074 = vpow2.f32 %v634_v56  ;;  %v632_v59 = vsub.f32 %v1377_v24, %v628_v58  ;;  %v633_v60 = vsub.f32 %v1379_v25, %v628_v58 }
 0x21a   : > { %1076 = vpow2.f32 %v636_v57 }
 0x21b   : > { %v638_v61 = vmul.f32 1.442695, %v632_v59  ;;  %v640_v62 = vmul.f32 1.442695, %v633_v60 }
 0x21d   : > { %1078 = vpow2.f32 %v638_v61 }
 0x21e   : > { %1080 = vpow2.f32 %v640_v62 }
 0x226   : > { %v1075_v63 = vpop.eup %1074 }
 0x227   : > { %v1077_v0 = vpop.eup %1076 }
 0x228   : > { %v642_v2 = vadd.f32 %v1077_v0, %v1075_v63  ;;  %v572_v3 = vpop.xlane.xlu0 %571 }
 0x229   : > { %vm573_vm10 = vcmp.eq.f32.partialorder %v570_v45, %v572_v3  ;;  %v578_v29 = vcvt.f32.s32 %v572_v3 }
 0x22a   : > { %643 = vadd.xlane.f32.xlu0 %v642_v2  ;;  %v1079_v5 = vpop.eup %1078  ;;  %v574_v7 = vsel %vm573_vm10, %v569_v4, inf }
 0x22b   : > { %v1081_v6 = vpop.eup %1080 }
 0x22c   : > { %v645_v8 = vadd.f32 %v1081_v6, %v1079_v5 }
 0x22e   : > { %575 = vmin.xlane.f32.xlu0 %v574_v7 }
 0x230   : > { %v660_v9 = vpop.permute.xlu0 %659 }
 0x231   : > { %vm664_vm11 = vcmp.eq.s32.totalorder %v1387_v31, %v660_v9  ;;  %vm665_vm12 = vcmp.eq.s32.totalorder %v1391_v33, %v660_v9 }
 0x232   : > { %646 = vadd.xlane.f32.xlu0 %v645_v8  ;;  %v668_v10 = vsel %vm664_vm11, %v1368_v18, 0.0  ;;  %v669_v11 = vsel %vm665_vm12, %v1370_v19, 0.0  ;;  %v614_v19 = vmul.f32 1.442695, %v612_v38 }
 0x233   : > { %v672_v12 = vadd.f32 %v669_v11, %v668_v10 }
 0x234   : > { %1082 = vpow2.f32 %v614_v19 }
 0x235   : > { %1084 = vpow2.f32 %v616_v22 }
 0x236   : > { %673 = vadd.xlane.f32.xlu0 %v672_v12 }
 0x241   : > { %v1083_v23 = vpop.eup %1082 }
 0x242   : > { %v618_v27 = vmul.f32 %v1083_v23, %v610_v26 }
 0x24a   : > { %v588_v14 = vpop.xlane.xlu1 %587 }
 0x24b   : > { %vm589_vm13 = vcmp.eq.f32.partialorder %v586_v51, %v588_v14  ;;  %v594_v47 = vcvt.f32.s32 %v588_v14  ;;  %v604_v51 = vld [vmem:[#allocation5 + $0x8] sm:$0xff] }
 0x24c   : > { %v590_v16 = vsel %vm589_vm13, %v585_v15, inf }
 0x24d   : > { %591 = vmin.xlane.f32.xlu1 %v590_v16  ;;  %v595_v49 = vshll.u32 %v594_v47, 16 }
 0x24e   : > { %v663_v17 = vpop.permute.xlu1 %662 }
 0x24f   : > { %vm666_vm14 = vcmp.eq.s32.totalorder %v1387_v31, %v663_v17  ;;  %vm667_vm15 = vcmp.eq.s32.totalorder %v1391_v33, %v663_v17  ;;  %v611_v31 = vld [vmem:[#allocation3 + $0x8] sm:$0xff]  ;;  %v579_v33 = vshll.u32 %v578_v29, 16 }
 0x250   : > { %v670_v20 = vsel %vm666_vm14, %v1377_v24, 0.0  ;;  %v671_v21 = vsel %vm667_vm15, %v1379_v25, 0.0  ;;  %v1085_v25 = vpop.eup %1084 }
 0x251   : > { %v675_v18 = vadd.f32 %v671_v21, %v670_v20  ;;  %v619_v38 = vmul.f32 %v1085_v25, %v611_v31 }
 0x253   : > { %676 = vadd.xlane.f32.xlu1 %v675_v18 }
 0x2b3   : > { %v644_v28 = vpop.xlane.xlu0 %643 }
 0x2b4   : > { %v648_v24 = vadd.f32 %v644_v28, %v618_v27 }
 0x2b6   : > { %650 = vst.msk [vmem:[#allocation3] sm:$0xff] %vm607_vm2, %v648_v24 }
 0x2b7   : > { %v576_v30 = vpop.xlane.xlu0 %575 }
 0x2b8   : > { %v577_v35 = vcvt.f32.s32 %v576_v30 }
 0x2ba   : > { %v580_v37 = vadd.s32 %v579_v33, %v577_v35 }
 0x2bb   : > { %v647_v41 = vpop.xlane.xlu0 %646 }
 0x2bc   : > { %v605_v42 = vsel %vm601_vm5, %v580_v37, %v603_v36  ;;  %v649_v43 = vadd.f32 %v647_v41, %v619_v38 }
 0x2bd   : > { %608 = vst.msk [vmem:[#allocation5] sm:$0xff] %vm607_vm2, %v605_v42 }
 0x2be   : > { %651 = vst.msk [vmem:[#allocation3 + $0x8] sm:$0xff] %vm607_vm2, %v649_v43 }
 0x2bf   : > { %v674_v45 = vpop.xlane.xlu0 %673 }
 0x2c0   : > { %v678_v46 = vadd.f32 %v674_v45, %v656_v44 }
 0x2c2   : > { %680 = vst.msk [vmem:[#allocation4] sm:$0xff] %vm607_vm2, %v678_v46 }
 0x2d6   : > { %v592_v48 = vpop.xlane.xlu1 %591 }
 0x2d7   : > { %v593_v50 = vcvt.f32.s32 %v592_v48 }
 0x2d9   : > { %v596_v52 = vadd.s32 %v595_v49, %v593_v50 }
 0x2db   : > { %v606_v34 = vsel %vm602_vm0, %v596_v52, %v604_v51  ;;  %685 = sbr.rel (%p976_p8) target bundleno = 759 (0x2f7), region = 52 }
 0x2dc   : > { %609 = vst.msk [vmem:[#allocation5 + $0x8] sm:$0xff] %vm607_vm2, %v606_v34  ;;  %v677_v53 = vpop.xlane.xlu1 %676 }
 0x2dd   : > { %v679_v54 = vadd.f32 %v677_v53, %v657_v32 }
 0x2df   : > { %681 = vst.msk [vmem:[#allocation4 + $0x8] sm:$0xff] %vm607_vm2, %v679_v54 }
 0x2e0   : > { %v701_v55 = vld [vmem:[#allocation3] sm:$0xff]  ;;  %v702_v56 = vld [vmem:[#allocation3 + $0x8] sm:$0xff]  ;;  %v719_v39 = vld [vmem:[%s1553_s3] sm:$0xff]  ;;  %v1208_v61 = vmov 0.0  }
 0x2e1   : > { %1086 = vlog2.f32 %v701_v55  ;;  %v717_v57 = vld [vmem:[#allocation5] sm:$0xff]  ;;  %v727_v40 = vld [vmem:[%s1554_s4] sm:$0xff]  ;;  %v720_v59 = vld [vmem:[%s1553_s3 + $0x8] sm:$0xff] }
 0x2e2   : > { %1088 = vlog2.f32 %v702_v56  ;;  %vm721_vm1 = vcmp.eq.s32.totalorder %v717_v57, %v719_v39  ;;  %v728_v60 = vld [vmem:[%s1554_s4 + $0x8] sm:$0xff]  ;;  %v699_v3 = vld [vmem:[#allocation2] sm:$0xff] }
 0x2e3   : > { %v718_v58 = vld [vmem:[#allocation5 + $0x8] sm:$0xff]  ;;  %v977_v62 = vsel %vm721_vm1, 1.0, %v1208_v61  ;;  %v700_v6 = vld [vmem:[#allocation2 + $0x8] sm:$0xff]  ;;  %v709_v7 = vld [vmem:[#allocation4] sm:$0xff] }
 0x2e4   : > { %vm722_vm3 = vcmp.eq.s32.totalorder %v718_v58, %v720_v59  ;;  %v729_v63 = vmul.f32 %v977_v62, %v727_v40 }
 0x2e5   : > { %v978_v0 = vsel %vm722_vm3, 1.0, %v1208_v61 }
 0x2e6   : > { %v730_v1 = vmul.f32 %v978_v0, %v728_v60  ;;  %733 = vst.msk [vmem:[%s1557_s7] sm:$0xff] %vm607_vm2, %v729_v63  ;;  %v710_v10 = vld [vmem:[#allocation4 + $0x8] sm:$0xff] }
 0x2e8   : > { %734 = vst.msk [vmem:[%s1557_s7 + $0x8] sm:$0xff] %vm607_vm2, %v730_v1 }
 0x2ee   : > { %v1087_v2 = vpop.eup %1086 }
 0x2ef   : > { %v1089_v4 = vpop.eup %1088  ;;  %v704_v5 = vmul.f32 0.6931472, %v1087_v2 }
 0x2f0   : > { %v706_v8 = vmul.f32 0.6931472, %v1089_v4 }
 0x2f1   : > { %v707_v9 = vadd.f32 %v704_v5, %v699_v3 }
 0x2f2   : > { %v708_v11 = vadd.f32 %v706_v8, %v700_v6 }
 0x2f3   : > { %v711_v12 = vsub.f32 %v707_v9, %v709_v7 }
 0x2f4   : > { %v712_v13 = vsub.f32 %v708_v11, %v710_v10 }
 0x2f5   : > { %715 = vst.msk [vmem:[%s1556_s6] sm:$0xff] %vm607_vm2, %v711_v12 }
 0x2f6   : > { %716 = vst.msk [vmem:[%s1556_s6 + $0x8] sm:$0xff] %vm607_vm2, %v712_v13 }
 0x2f7 PF: > { %s991_s10 = sshll.u32 %s1190_s27, 7  ;;  %s762_s17 = sshll.u32 %s1353_s12, 4  ;;  %s1502_s17 = int_to_ptr.vmem [resolvable:$true] %s762_s17 }
 0x2f8   : > { %s1499_s11 = scalar_lea.hbm %s1555_s5, %s991_s10  ;;  %s736_s18 = scalar_lea.sflag [#allocation8], %s1335_s9 }
 0x2f9   : > { %s1118_s28 = scalar_lea.vmem %s1502_s17, 256  ;;  %s1209_s20 = smov [#allocation9]  }
 0x2fa   : > { %p1119_p2 = scmp.ne.s32.totalorder %s1502_s17, %s1118_s28  ;;  %s1122_s21 = sshll.u32 %s1209_s20, 4  ;;  %s1123_s21 = int_to_ptr.vmem [resolvable:$false] %s1122_s21 }
 0x2fb   : > { %s1124_s27 = scalar_lea.vmem %s1123_s21, 512  ;;  %p1125_p6 = scmp.lt.s32.totalorder %s1502_s17, %s1123_s21 }
 0x2fc   : > { %p1120_p3 = pnand %p1119_p2, %p1304_p9  ;;  %p1126_p7 = scmp.lt.s32.totalorder %s1124_s27, %s1118_s28 }
 0x2fe   : > { %p1121_p5 = pneg %p1120_p3  ;;  %p1127_p10 = por %p1126_p7, %p1125_p6 }
 0x300   : > { %p1128_p4 = pnand %p1127_p10, %p1121_p5 }
 0x302   : > { %1131 = shalt.err (!%p1128_p4)
}
 0x303   : > { %s1132_s12 = scalar_lea.hbm %s1499_s11, 256  ;;  %s1136_s30 = scalar_lea.hbm %s1555_s5, 512 }
 0x304   : > { %p1133_p13 = scmp.ne.s32.totalorder %s1499_s11, %s1132_s12  ;;  %p1137_p0 = scmp.lt.s32.totalorder %s1499_s11, %s1555_s5 }
 0x305   : > { %p1138_p8 = scmp.lt.s32.totalorder %s1136_s30, %s1132_s12 }
 0x306   : > { %p1134_p1 = pnand %p1133_p13, %p1304_p9 }
 0x307   : > { %p1139_p2 = por %p1138_p8, %p1137_p0 }
 0x308   : > { %p1135_p12 = pneg %p1134_p1 }
 0x30a   : > { %p1140_p3 = pnand %p1139_p2, %p1135_p12 }
 0x30c   : > { %1143 = shalt.err (!%p1140_p3)
}
 0x30d   : > { %s1210_s13 = smov 128   ;;  %s1211_s19 = smov 256  }
 0x30e   : > { %s1212_s28 = smov 8  }
 0x30f   : > { %994 = dma.vmem_to_hbm [thread:$0]  (%p1304_p9), %s1502_s17, 256, %s1499_s11, %s736_s18, %s1210_s13, %s1211_s19, %s1212_s28  }
 0x310 PF: > { %s801_s20 = sand.u32 1, %s1178_s24   ;;  %p1567_p5 = scmp.ge.s32.totalorder %s1198_s29, 2 }
 0x311   : > { %s802_s21 = scalar_lea.sflag [#allocation8], %s801_s20 }
 0x312   : > { %p1001_p6 = pnand %p1567_p5, %p1311_p11 }
 0x314   : > { %p1002_p7 = pneg %p1001_p6 }
 0x316   : > { %1173 = dma.done.wait (%p1002_p7), %s802_s21, 256  }
 0x317   : > { %1175 = vsyncadd (%p1002_p7), %s802_s21, 4294967040  ;;  %s24_s29 = sadd.s32 1, %s1198_s29   ;;  %s1568_s27 = sld [smem:[#allocation12_spill]] }
 0x318   : > { %p21_p10 = scmp.ge.s32.totalorder %s24_s29, 4   ;;  %s1569_s28 = sld [smem:[#allocation13_spill]] }
 0x319   : > { %s1570_s24 = smov %s1182_s25  ;;  %s1571_s25 = smov %s1186_s26 }
 0x31a   : > { %s1572_s26 = smov %s1309_s15  ;;  %23 = sbr.rel (!%p21_p10) target bundleno = 6 (0x6), region = 129 }
 0x31f   :  { %807 = vsyncpa [#allocation7], 1 }
 0x320   :  { %809 = vsyncpa [#allocation7 + $0x1], 1 }
 0x321   :  { %810 = vsyncpa [#allocation8], 1 }
 0x322   :  { %812 = vsyncpa [#allocation8 + $0x1], 1 }

</bundles_post_ra>
